<compile_context>
chip_gen: v5e
topology: v5e:2x2
jax: 0.10.0
libtpu: 0.0.40
codegen_flags: <defaults>
</compile_context>

<pallas_src>
import functools

import jax
import jax.numpy as jnp
from jax import lax
from jax.experimental import pallas as pl
from jax.experimental.pallas import tpu as pltpu


def _occ_loss_kernel(z_ref, o_ref, *, ord):
    # z_ref: (2, TILE_B, D) block of the stacked embeddings, native dtype.
    # o_ref: (1, 1, TILE_B) f32 lane-dense output row.
    a = z_ref[0].astype(jnp.float32)
    b = z_ref[1].astype(jnp.float32)
    d = a - b
    dsq = d * d                                           # (TILE_B, D) f32
    # Row-sum over D on the MXU (idle otherwise), producing the result
    # lane-major directly: ones(8, D) contracted with dsq over D -> (8, TILE_B).
    ones = jnp.ones((8, dsq.shape[-1]), jnp.float32)
    sums = lax.dot_general(
        ones, dsq, (((1,), (1,)), ((), ())),
        precision=lax.Precision.HIGHEST,
        preferred_element_type=jnp.float32)               # (8, TILE_B)
    row = sums[0:1, :]                                    # (1, TILE_B)
    if ord == 2:
        out = row                                         # pow(norm, 2) == sum of squares
    else:
        out = jnp.sqrt(row) ** ord                        # EUP path, slot is idle
    o_ref[...] = out.reshape(o_ref.shape)


def _round_up(x, m):
    return ((x + m - 1) // m) * m


def _choose_tile_b(B, D, dtype):
    """Generation-aware tile size + scoped-VMEM limit."""
    itemsize = jnp.dtype(dtype).itemsize
    # Sublane packing: f32 -> 8, bf16 -> 16, int8/fp8 -> 32.
    sub = {4: 8, 2: 16, 1: 32}.get(itemsize, 8)

    try:
        cap = int(pltpu.get_tpu_info().vmem_capacity_bytes)   # 64 MiB v7x, 128 MiB v5e/v6e
    except Exception:
        cap = 64 * 1024 * 1024                                # conservative fallback
    budget = cap // 2                                         # total kernel VMEM target
    vmem_limit = int(min((cap * 3) // 4, 100 * 1024 * 1024))  # explicit scoped limit

    # Per-row VMEM cost: double-buffered native input (2 halves x 2 buffers)
    # + ~3x f32 in-kernel temporaries (a/b, d, dsq) + lane-dense output.
    per_row = D * (4 * itemsize + 12) + 16
    vmem_rows = max(sub, budget // max(1, per_row))

    # Keep >= 4 grid steps (>= 2 per TensorCore on v7x) when B is large enough.
    split_rows = max(sub, -(-B // 4))

    tile = min(8192, vmem_rows, split_rows, _round_up(B, sub))
    # Round: multiple of 128 when large (lane-dense output), else sublane pack.
    align = 128 if tile >= 128 else sub
    tile = max(sub, (tile // align) * align)
    return tile, vmem_limit


def occ_loss(z_c, ord=2, eval=False):
    """z_c: array of shape (2, ..., D); returns ||z_c[0]-z_c[1]||_2 ** ord over last dim."""
    assert z_c.shape[0] == 2, z_c.shape
    lead_shape = z_c.shape[1:-1]
    D = z_c.shape[-1]
    z2 = z_c.reshape(2, -1, D)
    B = z2.shape[1]

    tile_b, vmem_limit = _choose_tile_b(B, D, z2.dtype)
    B_pad = _round_up(B, tile_b)
    if B_pad != B:
        # Zero padding: padded rows diff to 0 -> loss 0, sliced off below.
        z2 = jnp.pad(z2, ((0, 0), (0, B_pad - B), (0, 0)))
    n_tiles = B_pad // tile_b

    kernel = functools.partial(_occ_loss_kernel, ord=ord)

    out = pl.pallas_call(
        kernel,
        out_shape=jax.ShapeDtypeStruct((n_tiles, 1, tile_b), jnp.float32),
        grid=(n_tiles,),
        in_specs=[
            # One DMA per step grabs both halves of the stacked buffer.
            pl.BlockSpec((2, tile_b, D), lambda i: (0, i, 0)),
        ],
        out_specs=pl.BlockSpec((1, 1, tile_b), lambda i: (i, 0, 0)),
        compiler_params=pltpu.CompilerParams(
            dimension_semantics=("parallel",),
            vmem_limit_bytes=vmem_limit,
        ),
    )(z2)

    diffs = out.reshape(B_pad)[:B].reshape(lead_shape)
    # eval flag does not change the returned value in the reference module.
    return diffs


if __name__ == "__main__":
    key = jax.random.PRNGKey(0)
    k0, k1 = jax.random.split(key)

    # Small shape matching the module's expected use (B embeddings of dim D).
    B, D = 8, 32
    z_c = jnp.stack(
        [
            jax.random.normal(k0, (B, D), dtype=jnp.float32),
            jax.random.normal(k1, (B, D), dtype=jnp.float32),
        ],
        axis=0,
    )
    result = jax.block_until_ready(occ_loss(z_c, ord=2))
    ref = jnp.sum((z_c[0] - z_c[1]) ** 2, axis=-1)
    assert result.shape == (B,), result.shape
    assert jnp.allclose(result, ref, rtol=1e-5, atol=1e-3), (result, ref)

    # Second check: multi-tile grid + batch padding + lane-dense output path.
    B2, D2 = 1100, 128
    k2, k3 = jax.random.split(k1)
    z_c2 = jnp.stack(
        [
            jax.random.normal(k2, (B2, D2), dtype=jnp.float32),
            jax.random.normal(k3, (B2, D2), dtype=jnp.float32),
        ],
        axis=0,
    )
    result2 = jax.block_until_ready(occ_loss(z_c2, ord=2))
    ref2 = jnp.sum((z_c2[0] - z_c2[1]) ** 2, axis=-1)
    assert result2.shape == (B2,), result2.shape
    assert jnp.allclose(result2, ref2, rtol=1e-5, atol=1e-3), (result2, ref2)

    # Third check: bf16 inputs exercise the sublane-packing (16-row) rounding
    # and the native-dtype DMA + in-kernel f32 cast path.
    B3, D3 = 200, 128
    k4, k5 = jax.random.split(k3)
    z_c3 = jnp.stack(
        [
            jax.random.normal(k4, (B3, D3), dtype=jnp.float32).astype(jnp.bfloat16),
            jax.random.normal(k5, (B3, D3), dtype=jnp.float32).astype(jnp.bfloat16),
        ],
        axis=0,
    )
    result3 = jax.block_until_ready(occ_loss(z_c3, ord=2))
    ref3 = jnp.sum(
        (z_c3[0].astype(jnp.float32) - z_c3[1].astype(jnp.float32)) ** 2, axis=-1
    )
    assert result3.shape == (B3,), result3.shape
    assert jnp.allclose(result3, ref3, rtol=1e-4, atol=1e-3), (result3, ref3)

    print("KERNEL_OK")
</pallas_src>

<mosaic_0001>
module attributes {stable_mosaic.version = 11 : i64} {
  func.func @_occ_loss_kernel(%arg0: i32, %arg1: memref<2x8x32xf32, #tpu.memory_space<vmem>>, %arg2: memref<1x1x8xf32, #tpu.memory_space<vmem>>) attributes {dimension_semantics = [#tpu.dimension_semantics<parallel>], iteration_bounds = array<i64: 1>, scalar_prefetch = 0 : i64, scratch_operands = 0 : i64, tpu.core_type = #tpu.core_type<tc>, window_params = [{transform_indices = @transform_0, window_bounds = array<i64: 2, 8, 32>}, {transform_indices = @transform_1, window_bounds = array<i64: 1, 1, 8>}]} {
    %c0 = arith.constant 0 : index
    %c0_0 = arith.constant 0 : index
    %c0_1 = arith.constant 0 : index
    %0 = vector.load %arg1[%c0, %c0_0, %c0_1] : memref<2x8x32xf32, #tpu.memory_space<vmem>>, vector<1x8x32xf32>
    %1 = vector.shape_cast %0 : vector<1x8x32xf32> to vector<8x32xf32>
    %c1 = arith.constant 1 : index
    %c0_2 = arith.constant 0 : index
    %c0_3 = arith.constant 0 : index
    %2 = vector.load %arg1[%c1, %c0_2, %c0_3] : memref<2x8x32xf32, #tpu.memory_space<vmem>>, vector<1x8x32xf32>
    %3 = vector.shape_cast %2 : vector<1x8x32xf32> to vector<8x32xf32>
    %4 = arith.subf %1, %3 : vector<8x32xf32>
    %5 = arith.mulf %4, %4 : vector<8x32xf32>
    %cst = arith.constant 1.000000e+00 : f32
    %6 = vector.broadcast %cst : f32 to vector<8x32xf32>
    %cst_4 = arith.constant dense<0.000000e+00> : vector<8x8xf32>
    %7 = tpu.matmul %6, %5, %cst_4 {dimension_numbers = #tpu.dot_dimension_numbers<[1], [1], [0], [0], [0, 0, 1, 0], [], []>, precision = #tpu.contract_precision<fp32>} : vector<8x32xf32>, vector<8x32xf32>, vector<8x8xf32> -> vector<8x8xf32>
    %8 = vector.extract_strided_slice %7 {offsets = [0, 0], sizes = [1, 8], strides = [1, 1]} : vector<8x8xf32> to vector<1x8xf32>
    %9 = vector.shape_cast %8 : vector<1x8xf32> to vector<1x1x8xf32>
    %c0_5 = arith.constant 0 : index
    %c0_6 = arith.constant 0 : index
    %c0_7 = arith.constant 0 : index
    %10 = vector.load %arg2[%c0_5, %c0_6, %c0_7] : memref<1x1x8xf32, #tpu.memory_space<vmem>>, vector<1x1x8xf32>
    tpu.vector_store %arg2[%c0_5, %c0_6, %c0_7], %9 {strides = array<i32>} : memref<1x1x8xf32, #tpu.memory_space<vmem>>, vector<1x1x8xf32>,
    return
  }
  func.func @transform_0(%arg0: i32) -> (i32, i32, i32) {
    %c0_i32 = arith.constant 0 : i32
    %c0_i32_0 = arith.constant 0 : i32
    %c0_i32_1 = arith.constant 0 : i32
    return %c0_i32, %arg0, %c0_i32_0 : i32, i32, i32
  }
  func.func @transform_1(%arg0: i32) -> (i32, i32, i32) {
    %c0_i32 = arith.constant 0 : i32
    %c0_i32_0 = arith.constant 0 : i32
    %c0_i32_1 = arith.constant 0 : i32
    return %arg0, %c0_i32, %c0_i32_0 : i32, i32, i32
  }
}

</mosaic_0001>

<bundles_post_ra>
// kernel: tpu_custom_call.1
= control target key start
LH: loop header
LB: loop body
LE: loop exit
PB: predicated region body
PF: predicated region fallthrough
CT: control target
= control target key end

     0   :  { %6 = vsyncpa [#allocation3], 0  ;;  %s290_s0 = inlined_call_operand.hbm [shape: f32[2,8,32], index: 0, kind: input, shape index: {}]   ;;  %s291_s1 = inlined_call_operand.hbm [shape: f32[1,1,8], index: 1, kind: output, shape index: {}]  }
   0x1   :  { %7 = vsyncpa [#allocation4], 0  ;;  %s12_s8 = sshll.u32 %s290_s0, 4  ;;  %s263_s9 = smov [#allocation2]   ;;  %s13_s8 = int_to_ptr.hbm [resolvable:$true] %s12_s8 }
   0x2   :  { %s14_s10 = sshll.u32 %s263_s9, 4  ;;  %s264_s11 = smov 128   ;;  %s15_s10 = int_to_ptr.vmem [resolvable:$true] %s14_s10 }
   0x3   :  { %s265_s12 = smov 8  }
   0x4   :  { %20 = dma.hbm_to_vmem [thread:$0]  %s13_s8, 256, %s15_s10, [#allocation3], %s264_s11, %s264_s11, %s265_s12  }
   0x5   :  { %259 = dma.done.wait [#allocation3], 256  }
   0x6   :  { %260 = vsyncadd [#allocation3], 4294967040  ;;  %vm30_vm0 = vcmask 261120   ;;  %v266_v0 = vmov 0   ;;  %v25_v4 = vld [vmem:[#allocation2] sm:$0xff]  ;;  %v27_v5 = vld [vmem:[#allocation2 + $0x8] sm:$0xff] }
   0x7   :  { %v32_v1 = vsel %vm30_vm0, 1.0, %v266_v0  ;;  %v28_v6 = vsub.f32 %v25_v4, %v27_v5  ;;  %v267_v16 = vmov 1.0   ;;  %s268_s0 = smov [#allocation5]   ;;  %s192_s16 = sshll.u32 %s291_s1, 4  ;;  %vm183_vm1 = vcmask 57344   ;;  %s193_s16 = int_to_ptr.hbm [resolvable:$true] %s192_s16 }
   0x8   :  { %v55_v2 = vsub.f32 %v32_v1, %v32_v1  ;;  %s190_s13 = sshll.u32 %s268_s0, 4  ;;  %s191_s13 = int_to_ptr.vmem [resolvable:$true] %s190_s13 }
   0x9   :  { %v29_v7 = vmul.f32 %v28_v6, %v28_v6 }
   0xa   :  { %v56_v3 = vand.u32 4294901760, %v55_v2 }
   0xb   :  { %v35_v9 = vsel %vm30_vm0, %v29_v7, 0 }
   0xc   :  { %v57_v8 = vsub.f32 %v55_v2, %v56_v3  ;;  %v52_v10 = vand.u32 4294901760, %v35_v9 }
   0xe   :  { %v58_v11 = vand.u32 4294901760, %v57_v8  ;;  %v79_v12 = vsub.f32 %v35_v9, %v52_v10  ;;  %53 = vmatpush.xpose.msra.mxu0 %v52_v10  ;;  %129 = vmatpush.xpose.msra.mxu3 %v52_v10 }
  0x10   :  { %106 = vmatpush.xpose.msra.mxu2 %v79_v12  ;;  %v80_v13 = vand.u32 4294901760, %v79_v12 }
  0x11   :  { %59 = vmatmul.f32.vlgmr.msra.gmra.mxu0 %v58_v11  ;;  %133 = vmatmul.f32.vlgmr.msra.gmra.mxu3 %v56_v3 }
  0x12   :  { %v81_v14 = vsub.f32 %v79_v12, %v80_v13  ;;  %155 = vmatpush.xpose.msrb.mxu0 %v80_v13 }
  0x13   :  { %109 = vmatmul.f32.vlgmr.msra.gmra.mxu2 %v55_v2 }
  0x14   :  { %v82_v15 = vand.u32 4294901760, %v81_v14 }
  0x16   :  { %83 = vmatpush.xpose.msra.mxu1 %v82_v15 }
  0x19   :  { %202 = vmatmul.msk.f32.vlgmr.msra.gmra.mxu1 %vm30_vm0, %v267_v16  ;;  %203 = vmatmul.msk.f32.vlgmr.msrb.gmra.mxu0 %vm30_vm0, %v267_v16 }
  0x1a   :  { %177 = vmatpush.xpose.msrb.mxu1 %v52_v10 }
  0x21   :  { %204 = vmatmul.msk.f32.vlgmr.msrb.gmra.mxu1 %vm30_vm0, %v267_v16 }
  0x8e   :  { %v60_v17 = vpop.f32.mrf.mxu0 }
  0x94   :  { %v134_v21 = vpop.f32.mrf.mxu3 }
  0x96   :  { %v86_v18 = vpop.f32.mrf.mxu1  ;;  %v110_v19 = vpop.f32.mrf.mxu2 }
  0x97   :  { %v87_v20 = vadd.f32 %v86_v18, %v60_v17  ;;  %v158_v23 = vpop.f32.mrf.mxu0 }
  0x99   :  { %v111_v22 = vadd.f32 %v110_v19, %v87_v20 }
  0x9b   :  { %v135_v24 = vadd.f32 %v134_v21, %v111_v22 }
  0x9d   :  { %v159_v25 = vadd.f32 %v158_v23, %v135_v24 }
  0x9e   :  { %v180_v26 = vpop.f32.mrf.mxu1 }
  0x9f   :  { %v181_v27 = vadd.f32 %v180_v26, %v159_v25 }
  0xa1   :  { %184 = vst.msk [vmem:[#allocation5] sm:$0x1] %vm183_vm1, %v181_v27 }
  0xa2   :  { %195 = dma.vmem_to_hbm [thread:$0]  %s191_s13, 16, %s193_s16, [#allocation4]  }
  0xa3   :  { %261 = dma.done.wait [#allocation4], 16  }
  0xa4   :  { %262 = vsyncadd [#allocation4], 4294967280 }
  0xa5   :  { %200 = vsyncpa [#allocation3], 1 }
  0xa6   :  { %201 = vsyncpa [#allocation4], 1 }

</bundles_post_ra>
